<compile_context>
chip_gen: v7x
topology: tpu7x:2x2x1
jax: 0.10.0
libtpu: 0.0.40
codegen_flags: <defaults>
</compile_context>

<pallas_src>
import functools

import jax
import jax.numpy as jnp
from jax.experimental import pallas as pl
from jax.experimental.pallas import tpu as pltpu

_LANE = 128              # vreg lane width
_ACC_ROWS = 64           # partial-sum bucket height -> 8 independent add chains
_MAX_BLOCK_ROWS = 8192   # 8192 x 128 f32 = 4 MiB per input block
_MIN_BLOCKS = 4          # keep the pipeline busy / feed both v7x TensorCores


def _mrae_kernel(o_ref, l_ref, psum_ref, *, block_rows, valid_rows):
    o = o_ref[...].astype(jnp.float32)
    l = l_ref[...].astype(jnp.float32)

    # |o - l| / l via reciprocal+mul (exact reciprocal; keeps f32 accuracy).
    rel = jnp.abs(o - l) * pl.reciprocal(l, approx=False)

    if valid_rows % block_rows != 0:  # static: compiled only when ragged
        # Last grid step only partially covers the array: zero the
        # out-of-range rows AFTER the divide with a single select.  A select
        # (not an arithmetic mask) safely discards any inf/nan produced by
        # garbage VMEM lanes.
        row = (pl.program_id(0) * block_rows
               + jax.lax.broadcasted_iota(jnp.int32, (block_rows, _LANE), 0))
        rel = jnp.where(row < valid_rows, rel, 0.0)

    # Fold the block into a (64, 128) bucket: 8 independent vreg accumulation
    # chains of ~block_rows/64 adds each (pure VPU work hidden under the input
    # DMA).  The tiny cross-lane reduce happens in the wrapper.
    psum_ref[...] = rel.reshape(-1, _ACC_ROWS, _LANE).sum(axis=0, keepdims=True)


def mrae_loss(outputs, label):
    """Pallas equivalent of Loss_MRAE.forward(outputs, label) -> scalar f32."""
    assert outputs.shape == label.shape
    n = outputs.size

    # Row-major flatten: a pure reshape, no copy, no dtype change in HBM.
    o_flat = outputs.reshape(-1)
    l_flat = label.reshape(-1)

    rows_total = n // _LANE

    if rows_total < _ACC_ROWS:
        # Degenerate tiny input (< 8192 elements): not worth a kernel launch.
        of = o_flat.astype(jnp.float32)
        lf = l_flat.astype(jnp.float32)
        return jnp.mean(jnp.abs(of - lf) / lf)

    main = rows_total * _LANE
    tail = n - main  # < 128 leftover elements, handled in plain JAX below

    # NOTE: when n % 128 != 0 the prefix slice materializes a copy of (nearly)
    # both inputs before the pallas_call (one extra HBM pass).  The common
    # NCHW shapes this loss is used on divide evenly, so this path is rare.
    o2d = (o_flat[:main] if tail else o_flat).reshape(rows_total, _LANE)
    l2d = (l_flat[:main] if tail else l_flat).reshape(rows_total, _LANE)

    # Block sizing: aim for >= _MIN_BLOCKS grid steps, rounded down to a
    # multiple of 64 rows (valid sublane packing for f32/bf16/int8), capped at
    # 4 MiB/input so double-buffering stays well inside 32 MiB scoped VMEM
    # even on v7x.
    target = pl.cdiv(rows_total, _MIN_BLOCKS)
    block_rows = max(_ACC_ROWS,
                     min(_MAX_BLOCK_ROWS, (target // _ACC_ROWS) * _ACC_ROWS))
    num_blocks = pl.cdiv(rows_total, block_rows)

    kernel = functools.partial(
        _mrae_kernel, block_rows=block_rows, valid_rows=rows_total)

    partial_sums = pl.pallas_call(
        kernel,
        out_shape=jax.ShapeDtypeStruct((num_blocks, _ACC_ROWS, _LANE),
                                       jnp.float32),
        grid_spec=pltpu.PrefetchScalarGridSpec(
            num_scalar_prefetch=0,
            grid=(num_blocks,),
            in_specs=[
                pl.BlockSpec((block_rows, _LANE), lambda i: (i, 0)),
                pl.BlockSpec((block_rows, _LANE), lambda i: (i, 0)),
            ],
            out_specs=pl.BlockSpec((1, _ACC_ROWS, _LANE),
                                   lambda i: (i, 0, 0)),
        ),
        compiler_params=pltpu.CompilerParams(
            dimension_semantics=("parallel",),   # lets v7x split across 2 TCs
            vmem_limit_bytes=32 * 1024 * 1024,
        ),
    )(o2d, l2d)

    total = jnp.sum(partial_sums)

    if tail:
        # Sub-128-element remainder: a few lanes of plain-JAX work.
        ot = o_flat[main:].astype(jnp.float32)
        lt = l_flat[main:].astype(jnp.float32)
        total = total + jnp.sum(jnp.abs(ot - lt) / lt)

    return total / n


if __name__ == "__main__":
    key = jax.random.PRNGKey(0)

    def check(shape, k):
        k1, k2 = jax.random.split(k)
        # Strictly positive labels, as in the hyperspectral-reconstruction
        # targets this loss is used for (avoids division by zero).
        outputs = jax.random.uniform(k1, shape, jnp.float32,
                                     minval=0.1, maxval=1.0)
        label = jax.random.uniform(k2, shape, jnp.float32,
                                   minval=0.1, maxval=1.0)
        got = jax.block_until_ready(mrae_loss(outputs, label))
        ref = jnp.mean(jnp.abs(outputs - label) / label)
        assert jnp.allclose(got, ref, rtol=1e-4, atol=1e-6), (shape, got, ref)

    keys = jax.random.split(key, 4)
    # Primary NCHW shape: divides evenly into (rows, 128); two full blocks.
    check((2, 4, 32, 64), keys[0])
    # Multi-block grid with a ragged last block (exercises in-kernel masking).
    check((2, 8, 163, 128), keys[1])
    # Element count not a multiple of 128 (wrapper tail + ragged last block).
    check((2, 4, 65, 33), keys[2])
    # Tiny input (< 8192 elements) takes the plain-JAX fallback.
    check((2, 4, 16, 16), keys[3])

    print("KERNEL_OK")
</pallas_src>

<mosaic_0001>
module attributes {stable_mosaic.version = 11 : i64} {
  func.func @_mrae_kernel(%arg0: i32, %arg1: memref<64x128xf32, #tpu.memory_space<vmem>>, %arg2: memref<64x128xf32, #tpu.memory_space<vmem>>, %arg3: memref<1x64x128xf32, #tpu.memory_space<vmem>>) attributes {dimension_semantics = [#tpu.dimension_semantics<parallel>], iteration_bounds = array<i64: 2>, scalar_prefetch = 0 : i64, scratch_operands = 0 : i64, tpu.core_type = #tpu.core_type<tc>, window_params = [{transform_indices = @transform_0, window_bounds = array<i64: 64, 128>}, {transform_indices = @transform_1, window_bounds = array<i64: 64, 128>}, {transform_indices = @transform_2, window_bounds = array<i64: 1, 64, 128>}]} {
    %c0 = arith.constant 0 : index
    %c0_0 = arith.constant 0 : index
    %0 = vector.load %arg1[%c0, %c0_0] : memref<64x128xf32, #tpu.memory_space<vmem>>, vector<64x128xf32>
    %c0_1 = arith.constant 0 : index
    %c0_2 = arith.constant 0 : index
    %1 = vector.load %arg2[%c0_1, %c0_2] : memref<64x128xf32, #tpu.memory_space<vmem>>, vector<64x128xf32>
    %2 = arith.subf %0, %1 : vector<64x128xf32>
    %3 = math.absf %2 : vector<64x128xf32>
    %4 = tpu.reciprocal %1 : vector<64x128xf32> -> vector<64x128xf32>
    %5 = arith.mulf %3, %4 : vector<64x128xf32>
    %6 = vector.shape_cast %5 : vector<64x128xf32> to vector<1x64x128xf32>
    %cst = arith.constant dense<0.000000e+00> : vector<64x128xf32>
    %7 = vector.multi_reduction <add>, %6, %cst [0] : vector<1x64x128xf32> to vector<64x128xf32>
    %8 = vector.shape_cast %7 : vector<64x128xf32> to vector<1x64x128xf32>
    %c0_3 = arith.constant 0 : index
    %c0_4 = arith.constant 0 : index
    %c0_5 = arith.constant 0 : index
    %9 = vector.load %arg3[%c0_3, %c0_4, %c0_5] : memref<1x64x128xf32, #tpu.memory_space<vmem>>, vector<1x64x128xf32>
    tpu.vector_store %arg3[%c0_3, %c0_4, %c0_5], %8 {strides = array<i32>} : memref<1x64x128xf32, #tpu.memory_space<vmem>>, vector<1x64x128xf32>,
    return
  }
  func.func @transform_0(%arg0: i32) -> (i32, i32) {
    %c0_i32 = arith.constant 0 : i32
    %c0_i32_0 = arith.constant 0 : i32
    return %arg0, %c0_i32 : i32, i32
  }
  func.func @transform_1(%arg0: i32) -> (i32, i32) {
    %c0_i32 = arith.constant 0 : i32
    %c0_i32_0 = arith.constant 0 : i32
    return %arg0, %c0_i32 : i32, i32
  }
  func.func @transform_2(%arg0: i32) -> (i32, i32, i32) {
    %c0_i32 = arith.constant 0 : i32
    %c0_i32_0 = arith.constant 0 : i32
    %c0_i32_1 = arith.constant 0 : i32
    return %arg0, %c0_i32, %c0_i32_0 : i32, i32, i32
  }
}

</mosaic_0001>

<bundles_post_ra>
// kernel: tpu_custom_call.1
= control target key start
LH: loop header
LB: loop body
LE: loop exit
PB: predicated region body
PF: predicated region fallthrough
CT: control target
= control target key end

     0   :  { %7 = vsyncpa [#allocation3], 0  ;;  %s862_s0 = inlined_call_operand.hbm [shape: f32[128,128], index: 0, kind: input, shape index: {}]   ;;  %s863_s1 = inlined_call_operand.hbm [shape: f32[128,128], index: 1, kind: input, shape index: {}]   ;;  %s864_s2 = inlined_call_operand.hbm [shape: f32[2,64,128], index: 2, kind: output, shape index: {}]  }
   0x1   :  { %9 = vsyncpa [#allocation3 + $0x1], 0 }
   0x2   :  { %10 = vsyncpa [#allocation6], 0 }
   0x3   :  { %12 = vsyncpa [#allocation6 + $0x1], 0 }
   0x4   :  { %13 = vsyncpa [#allocation4], 0 }
   0x5   :  { %15 = vsyncpa [#allocation4 + $0x1], 0  ;;  %s624_s9 = smov 0   ;;  %s626_s10 = smov 0  }
   0x6   :  { %s628_s11 = smov 0   ;;  %s630_s12 = smov 0  }
   0x7 LB: > { %s645_s13 = sadd.s32 4294967295, %s600_s12   ;;  %s378_s14 = sadd.s32 4294967294, %s600_s12   ;;  %s600_s12 = sphi %s630_s12, %s880_s12   ;;  %s596_s11 = sphi %s628_s11, %s879_s11   ;;  %s592_s10 = sphi %s626_s10, %s878_s10   ;;  %s588_s9 = sphi %s624_s9, %s877_s9  }
   0x8   : > { %s649_s15 = sadd.s32 1, %s600_s12   ;;  %s28_s16 = sadd.s32 1, %s596_s11 }
   0x9   : > { %s25_s17 = ssub.s32 %s600_s12, %s649_s15  ;;  %p35_p0 = scmp.ne.s32.totalorder %s596_s11, %s592_s10 }
   0xa   : > { %p26_p1 = scmp.eq.s32.totalorder %s25_s17, 0  ;;  %p36_p2 = scmp.eq.s32.totalorder %s600_s12, 0 }
   0xb   : > { %p41_p3 = scmp.ne.s32.totalorder %s592_s10, %s588_s9  ;;  %p42_p4 = scmp.eq.s32.totalorder %s645_s13, 0 }
   0xc   : > { %s661_s18 = scalar_select %p26_p1, %s596_s11, %s28_s16  }
   0xd   : > { %p663_p5 = por %p36_p2, %p35_p0  ;;  %p667_p6 = por %p42_p4, %p41_p3 }
   0xe   : > { %p91_p7 = scmp.eq.s32.totalorder %s645_s13, 1  ;;  %p97_p8 = scmp.eq.s32.totalorder %s378_s14, 1 }
   0xf   : > { %s868_s20 = scalar_select %p667_p6, 1, 0 }
  0x10   : > { %p416_p10 = scmp.lt.s32.totalorder %s600_s12, 2  ;;  %p674_p11 = por %p91_p7, %p35_p0 }
  0x11   : > { %p678_p12 = por %p97_p8, %p41_p3  ;;  %s683_s23 = sand.u32 1, %s596_s11  }
  0x12   : > { %s869_s21 = scalar_select %p674_p11, 1, 0 }
  0x13   : > { %s870_s22 = scalar_select %p678_p12, 1, 0 }
  0x14   : > { %s396_s24 = sshll.u32 %s600_s12, 10  ;;  %s381_s25 = sshll.u32 %s683_s23, 6 }
  0x15   : > { %s692_s28 = scalar_lea.hbm %s862_s0, %s396_s24  ;;  %s121_s29 = scalar_lea.vmem [#allocation2], %s381_s25 }
  0x16   : > { %s128_s30 = sshll.u32 %s121_s29, 4  ;;  %p698_p13 = pnand %p416_p10, %p663_p5  ;;  %s702_s30 = int_to_ptr.vmem [resolvable:$true] %s128_s30 }
  0x17   : > { %s118_s4 = scalar_lea.sflag [#allocation3], %s683_s23  ;;  %s470_s5 = scalar_lea.hbm %s692_s28, 1024 }
  0x18   : > { %p471_p0 = scmp.ne.s32.totalorder %s692_s28, %s470_s5  ;;  %p472_p1 = pneg %p698_p13 }
  0x19   : > { %s475_s8 = scalar_lea.hbm %s862_s0, 2048  ;;  %p476_p4 = scmp.lt.u32.totalorder %s692_s28, %s862_s0 }
  0x1a   : > { %p473_p2 = pnand %p472_p1, %p471_p0  ;;  %p477_p5 = scmp.lt.u32.totalorder %s475_s8, %s470_s5 }
  0x1b   : > { %p479_p8 = scmp.lt.u32.totalorder %s470_s5, %s692_s28 }
  0x1c   : > { %p474_p3 = pneg %p473_p2  ;;  %p478_p7 = por %p477_p5, %p476_p4 }
  0x1e   : > { %p480_p10 = por %p479_p8, %p478_p7 }
  0x20   : > { %p481_p9 = pnand %p480_p10, %p474_p3 }
  0x22   : > { %484 = shalt.err (!%p481_p9)
}
  0x23   : > { %s485_s17 = scalar_lea.vmem %s702_s30, 1024  ;;  %s602_s19 = smov [#allocation2]  }
  0x24   : > { %p486_p0 = scmp.ne.s32.totalorder %s702_s30, %s485_s17  ;;  %s490_s26 = sshll.u32 %s602_s19, 4  ;;  %s491_s26 = int_to_ptr.vmem [resolvable:$false] %s490_s26 }
  0x25   : > { %s492_s27 = scalar_lea.vmem %s491_s26, 2048  ;;  %p493_p11 = scmp.lt.s32.totalorder %s702_s30, %s491_s26 }
  0x26   : > { %p488_p2 = pnand %p486_p0, %p472_p1  ;;  %p494_p4 = scmp.lt.s32.totalorder %s492_s27, %s485_s17 }
  0x28   : > { %p489_p12 = pneg %p488_p2  ;;  %p495_p5 = por %p494_p4, %p493_p11 }
  0x2a   : > { %p496_p7 = pnand %p495_p5, %p489_p12 }
  0x2c   : > { %499 = shalt.err (!%p496_p7)
}
  0x2d   : > { %s603_s29 = smov 128   ;;  %s604_s5 = smov 8  }
  0x2e   : > { %408 = dma.hbm_to_vmem [thread:$0]  (!%p698_p13), %s692_s28, 1024, %s702_s30, %s118_s4, %s603_s29, %s603_s29, %s604_s5  }
  0x2f   : > { %p387_p9 = scmp.ge.s32.totalorder %s600_s12, 1  ;;  %p157_p11 = scmp.lt.s32.totalorder %s600_s12, 3 }
  0x30   : > { %s746_s14 = scalar_lea.hbm %s863_s1, %s396_s24  ;;  %s142_s16 = scalar_lea.vmem [#allocation5], %s381_s25 }
  0x31   : > { %p737_p12 = pnand %p387_p9, %p157_p11  ;;  %s149_s17 = sshll.u32 %s142_s16, 4  ;;  %s750_s17 = int_to_ptr.vmem [resolvable:$true] %s149_s17 }
  0x32   : > { %s139_s28 = scalar_lea.sflag [#allocation6], %s683_s23  ;;  %s500_s30 = scalar_lea.hbm %s746_s14, 1024 }
  0x33   : > { %p501_p3 = scmp.ne.s32.totalorder %s746_s14, %s500_s30  ;;  %s505_s24 = scalar_lea.hbm %s863_s1, 2048 }
  0x34   : > { %p506_p0 = scmp.lt.u32.totalorder %s746_s14, %s863_s1  ;;  %p507_p2 = scmp.lt.u32.totalorder %s505_s24, %s500_s30 }
  0x35   : > { %p503_p8 = pnand %p501_p3, %p472_p1  ;;  %p509_p5 = scmp.lt.u32.totalorder %s500_s30, %s746_s14 }
  0x36   : > { %p508_p4 = por %p507_p2, %p506_p0 }
  0x37   : > { %p504_p10 = pneg %p503_p8 }
  0x38   : > { %p510_p7 = por %p509_p5, %p508_p4 }
  0x3a   : > { %p511_p9 = pnand %p510_p7, %p504_p10 }
  0x3c   : > { %514 = shalt.err (!%p511_p9)
}
  0x3d   : > { %s515_s25 = scalar_lea.vmem %s750_s17, 1024  ;;  %s605_s7 = smov [#allocation5]  }
  0x3e   : > { %p516_p11 = scmp.ne.s32.totalorder %s750_s17, %s515_s25  ;;  %s520_s8 = sshll.u32 %s605_s7, 4  ;;  %s521_s8 = int_to_ptr.vmem [resolvable:$false] %s520_s8 }
  0x3f   : > { %s522_s16 = scalar_lea.vmem %s521_s8, 2048  ;;  %p523_p6 = scmp.lt.s32.totalorder %s750_s17, %s521_s8 }
  0x40   : > { %p518_p3 = pnand %p516_p11, %p472_p1  ;;  %p524_p0 = scmp.lt.s32.totalorder %s522_s16, %s515_s25 }
  0x42   : > { %p519_p8 = pneg %p518_p3  ;;  %p525_p2 = por %p524_p0, %p523_p6 }
  0x44   : > { %p526_p4 = pnand %p525_p2, %p519_p8 }
  0x46   : > { %529 = shalt.err (!%p526_p4)
}
  0x47   : > { %411 = dma.hbm_to_vmem [thread:$0]  (!%p698_p13), %s746_s14, 1024, %s750_s17, %s139_s28, %s603_s29, %s603_s29, %s604_s5  }
  0x48   : > { %161 = sbr.rel (%p737_p12) target bundleno = 118 (0x76), region = 28  ;;  %s784_s30 = sand.u32 (!%p737_p12), 1, %s592_s10  }
  0x49   : > { %s787_s4 = sshll.u32 (!%p737_p12), %s784_s30, 6  ;;  %s164_s3 = scalar_lea.sflag (!%p737_p12), [#allocation3], %s784_s30 }
  0x4a   : > { %s791_s19 = scalar_lea.vmem (!%p737_p12), [#allocation2], %s787_s4  ;;  %p873_p6 = scmp.ne.s32.totalorder (!%p737_p12), %s868_s20, 0 }
  0x4f   : > { %575 = dma.done.wait (%p873_p6), %s164_s3, 1024  }
  0x50   : > { %577 = vsyncadd (%p873_p6), %s164_s3, 4294966272  ;;  %s173_s23 = scalar_lea.sflag [#allocation6], %s784_s30  ;;  %s176_s29 = scalar_lea.vmem [#allocation5], %s787_s4 }
  0x51   : > { %579 = dma.done.wait (%p873_p6), %s173_s23, 1024  }
  0x52   : > { %581 = vsyncadd (%p873_p6), %s173_s23, 4294966272  ;;  %v212_v0 = vld [vmem:[%s176_s29] sm:$0xff]  ;;  %v213_v2 = vld [vmem:[%s176_s29 + $0x8] sm:$0xff]  ;;  %s201_s20 = scalar_lea.vmem [#allocation7], %s787_s4  ;;  %s398_s6 = sshll.u32 %s645_s13, 10 }
  0x53   : > { %v204_v1 = vld [vmem:[%s791_s19] sm:$0xff]  ;;  %454 = vrcp.f32 %v212_v0  ;;  %v214_v3 = vld [vmem:[%s176_s29 + $0x10] sm:$0xff]  ;;  %v205_v4 = vld [vmem:[%s791_s19 + $0x8] sm:$0xff]  ;;  %s282_s5 = sshll.u32 %s201_s20, 4  ;;  %s818_s13 = scalar_lea.hbm %s864_s2, %s398_s6  ;;  %s813_s5 = int_to_ptr.vmem [resolvable:$true] %s282_s5 }
  0x54   : > { %456 = vrcp.f32 %v213_v2  ;;  %v215_v5 = vld [vmem:[%s176_s29 + $0x18] sm:$0xff]  ;;  %v206_v6 = vld [vmem:[%s791_s19 + $0x10] sm:$0xff]  ;;  %v216_v7 = vld [vmem:[%s176_s29 + $0x20] sm:$0xff]  ;;  %v220_v9 = vsub.f32 %v204_v1, %v212_v0  ;;  %v221_v12 = vsub.f32 %v205_v4, %v213_v2  ;;  %s269_s28 = scalar_lea.sflag [#allocation4], %s784_s30  ;;  %s530_s24 = scalar_lea.vmem %s813_s5, 1024 }
  0x55   : > { %458 = vrcp.f32 %v214_v3  ;;  %v217_v8 = vld [vmem:[%s176_s29 + $0x28] sm:$0xff]  ;;  %v207_v10 = vld [vmem:[%s791_s19 + $0x18] sm:$0xff]  ;;  %v218_v11 = vld [vmem:[%s176_s29 + $0x30] sm:$0xff]  ;;  %v222_v15 = vsub.f32 %v206_v6, %v214_v3  ;;  %p531_p13 = scmp.ne.s32.totalorder %s813_s5, %s530_s24  ;;  %p874_p1 = scmp.ne.s32.totalorder %s869_s21, 0 }
  0x56   : > { %460 = vrcp.f32 %v215_v5  ;;  %v208_v13 = vld [vmem:[%s791_s19 + $0x20] sm:$0xff]  ;;  %v219_v14 = vld [vmem:[%s176_s29 + $0x38] sm:$0xff]  ;;  %v209_v16 = vld [vmem:[%s791_s19 + $0x28] sm:$0xff]  ;;  %v223_v17 = vsub.f32 %v207_v10, %v215_v5  ;;  %v228_v19 = vand.u32 2147483647, %v220_v9  ;;  %s606_s26 = smov [#allocation7]  }
  0x57   : > { %462 = vrcp.f32 %v216_v7  ;;  %v210_v18 = vld [vmem:[%s791_s19 + $0x30] sm:$0xff]  ;;  %v224_v20 = vsub.f32 %v208_v13, %v216_v7  ;;  %v211_v21 = vld [vmem:[%s791_s19 + $0x38] sm:$0xff]  ;;  %v229_v22 = vand.u32 2147483647, %v221_v12  ;;  %v225_v23 = vsub.f32 %v209_v16, %v217_v8  ;;  %p532_p12 = pnand %p531_p13, %p874_p1  ;;  %s534_s27 = sshll.u32 %s606_s26, 4  ;;  %s535_s27 = int_to_ptr.vmem [resolvable:$false] %s534_s27 }
  0x58   : > { %464 = vrcp.f32 %v217_v8  ;;  %v230_v24 = vand.u32 2147483647, %v222_v15  ;;  %v226_v25 = vsub.f32 %v210_v18, %v218_v11  ;;  %v231_v27 = vand.u32 2147483647, %v223_v17  ;;  %s536_s25 = scalar_lea.vmem %s535_s27, 2048  ;;  %p537_p5 = scmp.lt.s32.totalorder %s813_s5, %s535_s27 }
  0x59   : > { %466 = vrcp.f32 %v218_v11  ;;  %v227_v28 = vsub.f32 %v211_v21, %v219_v14  ;;  %v232_v31 = vand.u32 2147483647, %v224_v20  ;;  %v233_v34 = vand.u32 2147483647, %v225_v23  ;;  %p533_p10 = pneg %p532_p12  ;;  %p538_p7 = scmp.lt.s32.totalorder %s536_s25, %s530_s24 }
  0x5a   : > { %468 = vrcp.f32 %v219_v14  ;;  %v234_v37 = vand.u32 2147483647, %v226_v25 }
  0x5b   : > { %v235_v40 = vand.u32 2147483647, %v227_v28  ;;  %p539_p9 = por %p538_p7, %p537_p5 }
  0x5d   : > { %v455_v26 = vpop.eup %454  ;;  %p540_p11 = pnand %p539_p9, %p533_p10 }
  0x5e   : > { %v457_v29 = vpop.eup %456  ;;  %v244_v30 = vmul.f32 %v455_v26, %v228_v19 }
  0x5f   : > { %v459_v32 = vpop.eup %458  ;;  %v245_v33 = vmul.f32 %v457_v29, %v229_v22 }
  0x60   : > { %v461_v35 = vpop.eup %460  ;;  %260 = vst [vmem:[%s201_s20] sm:$0xff] %v244_v30  ;;  %v246_v36 = vmul.f32 %v459_v32, %v230_v24 }
  0x61   : > { %v463_v38 = vpop.eup %462  ;;  %261 = vst [vmem:[%s201_s20 + $0x8] sm:$0xff] %v245_v33  ;;  %v247_v39 = vmul.f32 %v461_v35, %v231_v27 }
  0x62   : > { %v465_v41 = vpop.eup %464  ;;  %262 = vst [vmem:[%s201_s20 + $0x10] sm:$0xff] %v246_v36  ;;  %v248_v42 = vmul.f32 %v463_v38, %v232_v31 }
  0x63   : > { %v467_v43 = vpop.eup %466  ;;  %263 = vst [vmem:[%s201_s20 + $0x18] sm:$0xff] %v247_v39  ;;  %v249_v44 = vmul.f32 %v465_v41, %v233_v34 }
  0x64   : > { %v469_v45 = vpop.eup %468  ;;  %264 = vst [vmem:[%s201_s20 + $0x20] sm:$0xff] %v248_v42  ;;  %v250_v46 = vmul.f32 %v467_v43, %v234_v37 }
  0x65   : > { %265 = vst [vmem:[%s201_s20 + $0x28] sm:$0xff] %v249_v44  ;;  %v251_v47 = vmul.f32 %v469_v45, %v235_v40 }
  0x66   : > { %266 = vst [vmem:[%s201_s20 + $0x30] sm:$0xff] %v250_v46 }
  0x67   : > { %267 = vst [vmem:[%s201_s20 + $0x38] sm:$0xff] %v251_v47 }
  0x68   : > { %543 = shalt.err (!%p540_p11)
}
  0x69   : > { %s544_s7 = scalar_lea.hbm %s818_s13, 1024  ;;  %s548_s4 = scalar_lea.hbm %s864_s2, 2048 }
  0x6a   : > { %p545_p3 = scmp.ne.s32.totalorder %s818_s13, %s544_s7  ;;  %p549_p2 = scmp.lt.u32.totalorder %s818_s13, %s864_s2 }
  0x6b   : > { %p550_p4 = scmp.lt.u32.totalorder %s548_s4, %s544_s7  ;;  %p552_p13 = scmp.lt.u32.totalorder %s544_s7, %s818_s13 }
  0x6c   : > { %p546_p8 = pnand %p545_p3, %p874_p1 }
  0x6d   : > { %p551_p6 = por %p550_p4, %p549_p2 }
  0x6e   : > { %p547_p0 = pneg %p546_p8 }
  0x6f   : > { %p553_p12 = por %p552_p13, %p551_p6 }
  0x71   : > { %p554_p10 = pnand %p553_p12, %p547_p0 }
  0x73   : > { %557 = shalt.err (!%p554_p10)
}
  0x74   : > { %s607_s23 = smov 128   ;;  %s608_s29 = smov 8  }
  0x75   : > { %403 = dma.vmem_to_hbm [thread:$0]  (%p874_p1), %s813_s5, 1024, %s818_s13, %s269_s28, %s607_s23, %s607_s23, %s608_s29  }
  0x76 PF: > { %s297_s20 = sand.u32 1, %s588_s9   ;;  %p875_p5 = scmp.ne.s32.totalorder %s870_s22, 0 }
  0x77   : > { %p876_p7 = scmp.ge.s32.totalorder %s600_s12, 2  ;;  %s298_s6 = scalar_lea.sflag [#allocation4], %s297_s20 }
  0x79   : > { %p413_p9 = pnand %p876_p7, %p875_p5 }
  0x7b   : > { %583 = dma.done.wait (!%p413_p9), %s298_s6, 1024  }
  0x7c   : > { %585 = vsyncadd (!%p413_p9), %s298_s6, 4294966272  ;;  %p18_p11 = scmp.ge.s32.totalorder %s649_s15, 4   ;;  %s877_s9 = smov %s592_s10 }
  0x7d   : > { %s878_s10 = smov %s596_s11  ;;  %s879_s11 = smov %s661_s18 }
  0x7e   : > { %s880_s12 = smov %s649_s15  ;;  %20 = sbr.rel (!%p18_p11) target bundleno = 7 (0x7), region = 86 }
  0x85   :  { %303 = vsyncpa [#allocation3], 1 }
  0x86   :  { %305 = vsyncpa [#allocation3 + $0x1], 1 }
  0x87   :  { %306 = vsyncpa [#allocation6], 1 }
  0x88   :  { %308 = vsyncpa [#allocation6 + $0x1], 1 }
  0x89   :  { %309 = vsyncpa [#allocation4], 1 }
  0x8a   :  { %311 = vsyncpa [#allocation4 + $0x1], 1 }

</bundles_post_ra>
